<compile_context>
chip_gen: v6e
topology: v6e:2x2x1
jax: 0.10.0
libtpu: 0.0.40
codegen_flags: <defaults>
</compile_context>

<pallas_src>
import math
import functools

import jax
import jax.numpy as jnp
from jax.experimental import pallas as pl
from jax.experimental.pallas import tpu as pltpu


def _pick_tile(dim, target, multiple=1):
    """Largest tile <= target that divides `dim` and is a multiple of `multiple`.
    Falls back to the full dimension (always a legal TPU block)."""
    if dim <= target:
        return dim
    for cand in range(target, 0, -1):
        if dim % cand == 0 and cand % multiple == 0:
            return cand
    return dim


# ----------------------------------------------------------------------------
# Kernel 1: tiled dense linear layer  out = x @ W + b  (f32 accumulation)
# ----------------------------------------------------------------------------
def _linear_kernel(x_ref, w_ref, b_ref, o_ref, acc_ref):
    @pl.when(pl.program_id(2) == 0)
    def _init():
        acc_ref[...] = jnp.zeros_like(acc_ref)

    acc_ref[...] += jnp.dot(x_ref[...], w_ref[...],
                            preferred_element_type=jnp.float32)

    @pl.when(pl.program_id(2) == pl.num_programs(2) - 1)
    def _finalize():
        o_ref[...] = (acc_ref[...] + b_ref[...]).astype(o_ref.dtype)


def pallas_linear(x, w, b, out_dtype=None, tm=256, tn=512, tk=1024):
    """x: (M, K), w: (K, N), b: (N,) -> (M, N) in out_dtype (bias added in f32)."""
    M, K = x.shape
    K2, N = w.shape
    assert K == K2
    out_dtype = out_dtype or x.dtype
    sub = 16 if x.dtype == jnp.bfloat16 else 8     # bf16 packs 2 rows / sublane
    tm = _pick_tile(M, tm, sub)
    tn = _pick_tile(N, tn, 128)
    tk = _pick_tile(K, tk, 128)
    grid = (M // tm, N // tn, K // tk)
    return pl.pallas_call(
        _linear_kernel,
        out_shape=jax.ShapeDtypeStruct((M, N), out_dtype),
        grid_spec=pltpu.PrefetchScalarGridSpec(
            num_scalar_prefetch=0,
            grid=grid,
            in_specs=[
                pl.BlockSpec((tm, tk), lambda i, j, k: (i, k)),
                pl.BlockSpec((tk, tn), lambda i, j, k: (k, j)),
                pl.BlockSpec((1, tn), lambda i, j, k: (0, j)),
            ],
            out_specs=pl.BlockSpec((tm, tn), lambda i, j, k: (i, j)),
            scratch_shapes=[pltpu.VMEM((tm, tn), jnp.float32)],
        ),
        compiler_params=pltpu.CompilerParams(
            dimension_semantics=("parallel", "parallel", "arbitrary"),
            vmem_limit_bytes=48 * 1024 * 1024,
        ),
    )(x, w, b.astype(jnp.float32).reshape(1, N))


# ----------------------------------------------------------------------------
# Kernel 2: scaled-dot-product attention.
# Grid = (batch, q-tile), all heads processed per step.
# Inputs: one fused, lane-dense (B, T, 3C) array passed twice:
#   - a (tq, 3C) block of q-rows for the current q tile,
#   - a (T, 3C) block of all rows for K/V (q-tile invariant).
# q is pre-scaled (scale folded into the projection weights).
# Outputs: att (B, H, T, T) and y directly in (B, T, C) layout (lane-dense).
# ----------------------------------------------------------------------------
def _attention_kernel(qrows_ref, kvrows_ref, att_ref, y_ref, *, n_head, head_dim):
    C = n_head * head_dim
    for h in range(n_head):                               # static unroll over heads
        lo = h * head_dim
        hi = lo + head_dim
        qh = qrows_ref[:, lo:hi]                          # (tq, hd), already scaled
        kh = kvrows_ref[:, C + lo:C + hi]                 # (T,  hd)
        vh = kvrows_ref[:, 2 * C + lo:2 * C + hi]         # (T,  hd)
        # scores = q @ k^T (contract over head_dim), f32 accumulation on the MXU
        s = jax.lax.dot_general(qh, kh, (((1,), (1,)), ((), ())),
                                preferred_element_type=jnp.float32)   # (tq, T)
        m = jnp.max(s, axis=-1, keepdims=True)
        p = jnp.exp(s - m)
        # exact normalization (torch.softmax parity; rows must sum to 1)
        att = p / jnp.sum(p, axis=-1, keepdims=True)
        att_ref[h] = att.astype(att_ref.dtype)
        yh = jnp.dot(att.astype(vh.dtype), vh, preferred_element_type=jnp.float32)
        # per-head static lane-slice store: no concat, bounded live ranges
        y_ref[:, lo:hi] = yh.astype(y_ref.dtype)


def pallas_attention(qkv, n_head, head_dim, att_dtype, tq_target=128):
    """qkv: (B, T, 3C) with rows laid out [q | k | v] -> (att (B,H,T,T), y (B,T,C))."""
    B, T, threeC = qkv.shape
    C = n_head * head_dim
    assert threeC == 3 * C
    sub = 16 if qkv.dtype == jnp.bfloat16 else 8
    tq = _pick_tile(T, tq_target, sub)
    grid = (B, T // tq)

    q_spec = pl.BlockSpec((None, tq, threeC), lambda b, i: (b, i, 0))
    kv_spec = pl.BlockSpec((None, T, threeC), lambda b, i: (b, 0, 0))
    att_spec = pl.BlockSpec((None, n_head, tq, T), lambda b, i: (b, 0, i, 0))
    y_spec = pl.BlockSpec((None, tq, C), lambda b, i: (b, i, 0))

    kern = functools.partial(_attention_kernel, n_head=n_head, head_dim=head_dim)
    return pl.pallas_call(
        kern,
        grid=grid,
        out_shape=(
            jax.ShapeDtypeStruct((B, n_head, T, T), att_dtype),
            jax.ShapeDtypeStruct((B, T, C), qkv.dtype),
        ),
        in_specs=[q_spec, kv_spec],
        out_specs=(att_spec, y_spec),
        compiler_params=pltpu.CompilerParams(
            dimension_semantics=("parallel", "parallel"),
            vmem_limit_bytes=40 * 1024 * 1024,
        ),
    )(qkv, qkv)


# ----------------------------------------------------------------------------
# Module wrapper (parameter container + forward glue).
# ----------------------------------------------------------------------------
class MultiHeadAttentionPallas:
    def __init__(self, n_embd, n_head, key, compute_dtype=jnp.float32):
        assert n_embd % n_head == 0
        self.n_embd = n_embd
        self.n_head = n_head
        self.head_dim = n_embd // n_head
        self.scale = 1.0 / math.sqrt(self.head_dim)
        self.compute_dtype = compute_dtype

        keys = jax.random.split(key, 8)
        bound = 1.0 / math.sqrt(n_embd)

        def w(k):  # stored as (in, out) = torch_weight.T
            return jax.random.uniform(k, (n_embd, n_embd), jnp.float32, -bound, bound)

        def b(k):
            return jax.random.uniform(k, (n_embd,), jnp.float32, -bound, bound)

        wq, bq = w(keys[0]), b(keys[1])
        wk, bk = w(keys[2]), b(keys[3])
        wv, bv = w(keys[4]), b(keys[5])
        self.wo, self.bo = w(keys[6]), b(keys[7])

        # Unscaled fused params (used by the pure-JAX reference).
        self.wqkv = jnp.concatenate([wq, wk, wv], axis=1)   # (C, 3C)
        self.bqkv = jnp.concatenate([bq, bk, bv])           # (3C,)

        # Kernel params: attention scale folded into the q third (zero runtime cost).
        self.wqkv_k = jnp.concatenate([wq * self.scale, wk, wv], axis=1).astype(compute_dtype)
        self.bqkv_k = jnp.concatenate([bq * self.scale, bk, bv])  # bias added in f32
        self.wo_c = self.wo.astype(compute_dtype)

    def __call__(self, x, mask=None):
        # TODO(synk): mask support (mask=None path only, matching the default call).
        assert mask is None
        B, T, C = x.shape
        cdt = self.compute_dtype

        xf = x.reshape(B * T, C).astype(cdt)
        # Fused q/k/v projection: x read from HBM once, lane-dense 3C output.
        qkv = pallas_linear(xf, self.wqkv_k, self.bqkv_k, out_dtype=cdt)
        # Truly free row-major reshape (C stays the lane/minor dim).
        qkv = qkv.reshape(B, T, 3 * C)

        att_dtype = jnp.float32 if cdt == jnp.float32 else cdt
        att, y = pallas_attention(qkv, self.n_head, self.head_dim, att_dtype=att_dtype)

        # y comes back in (B, T, C) layout -> free reshape for the output projection.
        out = pallas_linear(y.reshape(B * T, C), self.wo_c, self.bo,
                            out_dtype=jnp.float32)
        return out.reshape(B, T, C), att


# ----------------------------------------------------------------------------
# Pure-JAX reference for verification (f32).
# ----------------------------------------------------------------------------
def reference_forward(m, x):
    B, T, C = x.shape
    H, hd = m.n_head, m.head_dim
    wq, wk, wv = jnp.split(m.wqkv, 3, axis=1)
    bq, bk, bv = jnp.split(m.bqkv, 3)
    q = (x @ wq + bq).reshape(B, T, H, hd).transpose(0, 2, 1, 3)
    k = (x @ wk + bk).reshape(B, T, H, hd).transpose(0, 2, 1, 3)
    v = (x @ wv + bv).reshape(B, T, H, hd).transpose(0, 2, 1, 3)
    s = jnp.einsum("bhqd,bhkd->bhqk", q, k) * m.scale
    att = jax.nn.softmax(s, axis=-1)
    y = jnp.einsum("bhqk,bhkd->bhqd", att, v)
    y = y.transpose(0, 2, 1, 3).reshape(B, T, C)
    out = y @ m.wo + m.bo
    return out, att


if __name__ == "__main__":
    B, T, n_embd, n_head = 2, 8, 32, 4

    key = jax.random.PRNGKey(0)
    k_param, k_x = jax.random.split(key)
    x = jax.random.normal(k_x, (B, T, n_embd), dtype=jnp.float32)

    # ---- f32 path: tight functional check against the pure-JAX reference ----
    mha = MultiHeadAttentionPallas(n_embd, n_head, k_param, compute_dtype=jnp.float32)
    out, att = mha(x)
    out = jax.block_until_ready(out)
    att = jax.block_until_ready(att)

    # attention rows must sum to 1 (same check the torch module performs)
    row_sums = jnp.sum(att, axis=-1)
    assert jnp.allclose(row_sums, jnp.ones_like(row_sums), atol=2e-3), row_sums

    out_ref, att_ref = reference_forward(mha, x)
    assert out.shape == (B, T, n_embd) and att.shape == (B, n_head, T, T)
    assert jnp.allclose(att, att_ref, atol=2e-3), float(jnp.max(jnp.abs(att - att_ref)))
    assert jnp.allclose(out, out_ref, atol=5e-3, rtol=5e-3), float(
        jnp.max(jnp.abs(out - out_ref)))

    # ---- bf16 MXU path (v6e/v7x fast path), f32 accumulation/softmax: loose check ----
    mha_b = MultiHeadAttentionPallas(n_embd, n_head, k_param, compute_dtype=jnp.bfloat16)
    out_b, att_b = mha_b(x)
    out_b = jax.block_until_ready(out_b)
    att_b = jax.block_until_ready(att_b)
    att_b_f32 = att_b.astype(jnp.float32)
    rs_b = jnp.sum(att_b_f32, axis=-1)
    assert jnp.allclose(rs_b, jnp.ones_like(rs_b), atol=2e-2), rs_b
    assert jnp.allclose(att_b_f32, att_ref, atol=2e-2), float(
        jnp.max(jnp.abs(att_b_f32 - att_ref)))
    assert jnp.allclose(out_b, out_ref, atol=0.25, rtol=0.1), float(
        jnp.max(jnp.abs(out_b - out_ref)))

    print("KERNEL_OK")
</pallas_src>

<mosaic_0001>
module attributes {stable_mosaic.version = 11 : i64} {
  func.func @_linear_kernel(%arg0: i32, %arg1: i32, %arg2: i32, %arg3: memref<16x32xf32, #tpu.memory_space<vmem>>, %arg4: memref<32x96xf32, #tpu.memory_space<vmem>>, %arg5: memref<1x96xf32, #tpu.memory_space<vmem>>, %arg6: memref<16x96xf32, #tpu.memory_space<vmem>>, %arg7: memref<16x96xf32, #tpu.memory_space<vmem>>) attributes {dimension_semantics = [#tpu.dimension_semantics<parallel>, #tpu.dimension_semantics<parallel>, #tpu.dimension_semantics<arbitrary>], iteration_bounds = array<i64: 1, 1, 1>, scalar_prefetch = 0 : i64, scratch_operands = 1 : i64, tpu.core_type = #tpu.core_type<tc>, window_params = [{transform_indices = @transform_0, window_bounds = array<i64: 16, 32>}, {transform_indices = @transform_1, window_bounds = array<i64: 32, 96>}, {transform_indices = @transform_2, window_bounds = array<i64: 1, 96>}, {transform_indices = @transform_3, window_bounds = array<i64: 16, 96>}]} {
    %c0_i32 = arith.constant 0 : i32
    %0 = arith.cmpi eq, %arg2, %c0_i32 : i32
    %1 = arith.extui %0 : i1 to i32
    %c0_i32_0 = arith.constant 0 : i32
    %2 = arith.cmpi ne, %1, %c0_i32_0 : i32
    scf.if %2 {
      %cst_10 = arith.constant 0.000000e+00 : f32
      %12 = vector.broadcast %cst_10 : f32 to vector<16x96xf32>
      %c0_11 = arith.constant 0 : index
      %c0_12 = arith.constant 0 : index
      %13 = vector.load %arg7[%c0_11, %c0_12] : memref<16x96xf32, #tpu.memory_space<vmem>>, vector<16x96xf32>
      tpu.vector_store %arg7[%c0_11, %c0_12], %12 {strides = array<i32>} : memref<16x96xf32, #tpu.memory_space<vmem>>, vector<16x96xf32>,
    } else {
    }
    %c0 = arith.constant 0 : index
    %c0_1 = arith.constant 0 : index
    %3 = vector.load %arg7[%c0, %c0_1] : memref<16x96xf32, #tpu.memory_space<vmem>>, vector<16x96xf32>
    %c0_2 = arith.constant 0 : index
    %c0_3 = arith.constant 0 : index
    %4 = vector.load %arg3[%c0_2, %c0_3] : memref<16x32xf32, #tpu.memory_space<vmem>>, vector<16x32xf32>
    %c0_4 = arith.constant 0 : index
    %c0_5 = arith.constant 0 : index
    %5 = vector.load %arg4[%c0_4, %c0_5] : memref<32x96xf32, #tpu.memory_space<vmem>>, vector<32x96xf32>
    %cst = arith.constant dense<0.000000e+00> : vector<16x96xf32>
    %6 = tpu.matmul %4, %5, %cst {dimension_numbers = #tpu.dot_dimension_numbers<[1], [0], [0], [1], [0, 0, 1, 1], [], []>} : vector<16x32xf32>, vector<32x96xf32>, vector<16x96xf32> -> vector<16x96xf32>
    %7 = arith.addf %3, %6 : vector<16x96xf32>
    %c0_6 = arith.constant 0 : index
    %c0_7 = arith.constant 0 : index
    %8 = vector.load %arg7[%c0_6, %c0_7] : memref<16x96xf32, #tpu.memory_space<vmem>>, vector<16x96xf32>
    tpu.vector_store %arg7[%c0_6, %c0_7], %7 {strides = array<i32>} : memref<16x96xf32, #tpu.memory_space<vmem>>, vector<16x96xf32>,
    %c0_i32_8 = arith.constant 0 : i32
    %9 = arith.cmpi eq, %arg2, %c0_i32_8 : i32
    %10 = arith.extui %9 : i1 to i32
    %c0_i32_9 = arith.constant 0 : i32
    %11 = arith.cmpi ne, %10, %c0_i32_9 : i32
    scf.if %11 {
      %c0_10 = arith.constant 0 : index
      %c0_11 = arith.constant 0 : index
      %12 = vector.load %arg7[%c0_10, %c0_11] : memref<16x96xf32, #tpu.memory_space<vmem>>, vector<16x96xf32>
      %c0_12 = arith.constant 0 : index
      %c0_13 = arith.constant 0 : index
      %13 = vector.load %arg5[%c0_12, %c0_13] : memref<1x96xf32, #tpu.memory_space<vmem>>, vector<1x96xf32>
      %14 = vector.broadcast %13 : vector<1x96xf32> to vector<16x96xf32>
      %15 = arith.addf %12, %14 : vector<16x96xf32>
      %c0_14 = arith.constant 0 : index
      %c0_15 = arith.constant 0 : index
      %16 = vector.load %arg6[%c0_14, %c0_15] : memref<16x96xf32, #tpu.memory_space<vmem>>, vector<16x96xf32>
      tpu.vector_store %arg6[%c0_14, %c0_15], %15 {strides = array<i32>} : memref<16x96xf32, #tpu.memory_space<vmem>>, vector<16x96xf32>,
    } else {
    }
    return
  }
  func.func @transform_0(%arg0: i32, %arg1: i32, %arg2: i32) -> (i32, i32) {
    %c0_i32 = arith.constant 0 : i32
    return %arg0, %arg2 : i32, i32
  }
  func.func @transform_1(%arg0: i32, %arg1: i32, %arg2: i32) -> (i32, i32) {
    %c0_i32 = arith.constant 0 : i32
    return %arg2, %arg1 : i32, i32
  }
  func.func @transform_2(%arg0: i32, %arg1: i32, %arg2: i32) -> (i32, i32) {
    %c0_i32 = arith.constant 0 : i32
    %c0_i32_0 = arith.constant 0 : i32
    return %c0_i32, %arg1 : i32, i32
  }
  func.func @transform_3(%arg0: i32, %arg1: i32, %arg2: i32) -> (i32, i32) {
    %c0_i32 = arith.constant 0 : i32
    return %arg0, %arg1 : i32, i32
  }
}

</mosaic_0001>

<bundles_post_ra>
// kernel: tpu_custom_call.1
= control target key start
LH: loop header
LB: loop body
LE: loop exit
PB: predicated region body
PF: predicated region fallthrough
CT: control target
= control target key end

     0   :  { %8 = vsyncpa [#allocation4], 0  ;;  %s326_s0 = inlined_call_operand.hbm [shape: f32[16,32], index: 0, kind: input, shape index: {}]   ;;  %s327_s1 = inlined_call_operand.hbm [shape: f32[32,96], index: 1, kind: input, shape index: {}]   ;;  %s328_s2 = inlined_call_operand.vmem [shape: f32[1,96], index: 2, kind: input, shape index: {}]   ;;  %s329_s3 = inlined_call_operand.hbm [shape: f32[16,96], index: 3, kind: output, shape index: {}]  }
   0x1   :  { %9 = vsyncpa [#allocation7], 0 }
   0x2   :  { %10 = vsyncpa [#allocation5], 0  ;;  %s271_s12 = smov [#allocation3]  }
   0x3   :  { %s16_s13 = sshll.u32 %s271_s12, 4  ;;  %s17_s13 = int_to_ptr.vmem [resolvable:$true] %s16_s13 }
   0x4   :  { %s213_s14 = scalar_lea.vmem %s17_s13, 256  ;;  %p218_p1 = scmp.lt.s32.totalorder %s17_s13, %s17_s13 }
   0x5   :  { %p214_p0 = scmp.ne.s32.totalorder %s17_s13, %s213_s14  ;;  %p219_p2 = scmp.lt.s32.totalorder %s213_s14, %s213_s14 }
   0x7   :  { %p220_p3 = por %p219_p2, %p218_p1 }
   0x9   :  { %p221_p4 = pnand %p220_p3, %p214_p0 }
   0xb   :  { %224 = shalt.err (!%p221_p4)
}
   0xc   :  { %s272_s15 = smov 128   ;;  %s273_s16 = smov 8  }
   0xd   :  { %22 = dma.hbm_to_vmem [thread:$0]  %s326_s0, 256, %s17_s13, [#allocation4], %s272_s15, %s272_s15, %s273_s16  }
   0xe   :  { %s274_s19 = smov [#allocation6]  }
   0xf   :  { %s28_s20 = sshll.u32 %s274_s19, 4  ;;  %s29_s20 = int_to_ptr.vmem [resolvable:$true] %s28_s20 }
  0x10   :  { %s233_s21 = scalar_lea.vmem %s29_s20, 512  ;;  %p238_p6 = scmp.lt.s32.totalorder %s29_s20, %s29_s20 }
  0x11   :  { %p234_p5 = scmp.ne.s32.totalorder %s29_s20, %s233_s21  ;;  %p239_p7 = scmp.lt.s32.totalorder %s233_s21, %s233_s21 }
  0x13   :  { %p240_p8 = por %p239_p7, %p238_p6 }
  0x15   :  { %p241_p9 = pnand %p240_p8, %p234_p5 }
  0x17   :  { %244 = shalt.err (!%p241_p9)
}
  0x18   :  { %34 = dma.hbm_to_vmem [thread:$0]  %s327_s1, 512, %s29_s20, [#allocation7], %s272_s15, %s272_s15, %s273_s16  }
  0x19   :  { %265 = dma.done.wait [#allocation4], 256  }
  0x1a   :  { %266 = vsyncadd [#allocation4], 4294967040 }
  0x1b   :  { %267 = dma.done.wait [#allocation7], 512  }
  0x1c   :  { %268 = vsyncadd [#allocation7], 4294966784  ;;  %vm47_vm0 = vcmask 785408   ;;  %v275_v0 = vmov 0.0   ;;  %vm58_vm1 = vcmask 261120   ;;  %v57_v1 = vld [vmem:[#allocation6 + $0x18] sm:$0xff] }
  0x1d   :  { %49 = vst.msk [vmem:[#allocation2 + $0x8] sm:$0xff] %vm47_vm0, %v275_v0  ;;  %48 = vst.msk [vmem:[#allocation2] sm:$0xff] %vm47_vm0, %v275_v0  ;;  %v56_v2 = vld [vmem:[#allocation6 + $0x10] sm:$0xff]  ;;  %188 = vmatprep.subr.mxu0 %v57_v1  ;;  %v55_v4 = vld [vmem:[#allocation6 + $0x8] sm:$0xff]  ;;  %s276_s24 = smov [#allocation8]  }
  0x1e   :  { %v52_v3 = vld [vmem:[#allocation3] sm:$0xff]  ;;  %189 = vmatpush3.msra.mxu0 %v57_v1  ;;  %v54_v5 = vld [vmem:[#allocation6] sm:$0xff]  ;;  %v53_v6 = vld [vmem:[#allocation3 + $0x8] sm:$0xff]  ;;  %s166_s25 = sshll.u32 %s276_s24, 4  ;;  %s167_s25 = int_to_ptr.vmem [resolvable:$true] %s166_s25 }
  0x1f   :  { %196 = vmatprep.mubr.msk.f32.mxu0 %vm58_vm1, %v52_v3  ;;  %190 = vmatprep.subr.mxu0 %v56_v2  ;;  %v181_v13 = vld [vmem:[%s328_s2] ss:$0 sm:$0xff]  ;;  %s245_s26 = scalar_lea.vmem %s167_s25, 256  ;;  %p250_p11 = scmp.lt.s32.totalorder %s167_s25, %s167_s25 }
  0x20   :  { %191 = vmatpush3.msra.mxu0 %v56_v2  ;;  %p246_p10 = scmp.ne.s32.totalorder %s167_s25, %s245_s26  ;;  %p251_p12 = scmp.lt.s32.totalorder %s245_s26, %s245_s26 }
  0x21   :  { %192 = vmatprep.subr.mxu0 %v55_v4 }
  0x22   :  { %193 = vmatpush3.msra.mxu0 %v55_v4  ;;  %p252_p13 = por %p251_p12, %p250_p11 }
  0x23   :  { %194 = vmatprep.subr.mxu0 %v54_v5 }
  0x24   :  { %195 = vmatpush3.msra.mxu0 %v54_v5  ;;  %v51_v7 = vld [vmem:[#allocation2 + $0x8] sm:$0xff]  ;;  %v50_v9 = vld [vmem:[#allocation2] sm:$0xff]  ;;  %p253_p0 = pnand %p252_p13, %p246_p10 }
  0x25   :  { %197 = vmatmul.mubr.msk.f32.vlgmr.msra.gmra.mxu0 %vm58_vm1, %v53_v6 }
  0xe5   :  { %v198_v8 = vpop.f32.mrf.mxu0 }
  0xe6   :  { %v141_v10 = vadd.f32 %v198_v8, %v51_v7 }
  0xe7   :  { %v131_v11 = vpop.f32.mrf.mxu0 }
  0xe8   :  { %144 = vst.msk [vmem:[#allocation2 + $0x8] sm:$0xff] %vm47_vm0, %v141_v10  ;;  %v140_v12 = vadd.f32 %v131_v11, %v50_v9 }
  0xea   :  { %143 = vst.msk [vmem:[#allocation2] sm:$0xff] %vm47_vm0, %v140_v12 }
  0xef   :  { %v149_v14 = vld [vmem:[#allocation2 + $0x8] sm:$0xff] }
  0xf0   :  { %v158_v15 = vadd.f32 %v181_v13, %v149_v14 }
  0xf1   :  { %v148_v16 = vld [vmem:[#allocation2] sm:$0xff] }
  0xf2   :  { %v157_v17 = vadd.f32 %v181_v13, %v148_v16  ;;  %160 = vst.msk [vmem:[#allocation8 + $0x8] sm:$0xff] %vm47_vm0, %v158_v15 }
  0xf4   :  { %159 = vst.msk [vmem:[#allocation8] sm:$0xff] %vm47_vm0, %v157_v17 }
  0xf5   :  { %256 = shalt.err (!%p253_p0)
}
  0xf6   :  { %172 = dma.vmem_to_hbm [thread:$0]  %s167_s25, 256, %s329_s3, [#allocation5], %s272_s15, %s272_s15, %s273_s16  }
  0xf7   :  { %269 = dma.done.wait [#allocation5], 256  }
  0xf8   :  { %270 = vsyncadd [#allocation5], 4294967040 }
  0xf9   :  { %176 = vsyncpa [#allocation4], 1 }
  0xfa   :  { %177 = vsyncpa [#allocation7], 1 }
  0xfb   :  { %178 = vsyncpa [#allocation5], 1 }

</bundles_post_ra>
